<compile_context>
chip_gen: v5e
topology: v5e:2x2
jax: 0.10.0
libtpu: 0.0.40
codegen_flags: <defaults>
</compile_context>

<pallas_src>
import jax
import jax.numpy as jnp
from jax.experimental import pallas as pl
from jax.experimental.pallas import tpu as pltpu

SPECTRAL = 31   # fixed by the module (view(-1, 31) / cie first dim)
OUT_CH = 3      # fixed by cie second dim


def _kernel(cie_ref, spec_ref, tgt_ref, out_ref):
    """One batch tile: partial = sum_{b,c,p} |(cie^T @ spec[b])[c,p] - tgt[b,c,p]|."""
    bt = spec_ref.shape[0]
    # (3, 31) stationary operand broadcast over the batch tile (tiny, per-step).
    cie_b = jnp.broadcast_to(cie_ref[...], (bt, OUT_CH, SPECTRAL))
    # Single fused batched matmul on the MXU; inputs consumed in native dtype
    # (f32 or bf16), f32 accumulation.
    recon = jnp.einsum('bcs,bsp->bcp', cie_b, spec_ref[...],
                       preferred_element_type=jnp.float32)        # (bt, 3, HW) f32
    diff = jnp.abs(recon - tgt_ref[...].astype(jnp.float32))
    out_ref[0, 0] = jnp.sum(diff)                                 # SMEM scalar partial


def _pick_batch_tile(B, per_row_bytes, max_block_bytes, min_grid=4):
    """Largest divisor of B whose spectral block stays under max_block_bytes,
    preferring tiles that leave >= min_grid grid steps (2 steps/TC on v7x)."""
    cap = max(1, max_block_bytes // per_row_bytes)
    divisors = [d for d in range(1, B + 1) if B % d == 0 and d <= cap]
    if not divisors:
        return 1
    preferred = [d for d in divisors if B // d >= min_grid]
    return max(preferred) if preferred else max(divisors)


def reconstruct_loss(network_input, network_output, cie,
                     *, max_block_bytes=6 * 1024 * 1024):
    """network_input: (B, 3, H, W); network_output: (B, 31, H, W); cie: (31, 3)."""
    B, S, H, W = network_output.shape
    assert S == SPECTRAL, network_output.shape
    assert cie.shape == (SPECTRAL, OUT_CH), cie.shape
    assert network_input.shape == (B, OUT_CH, H, W), network_input.shape
    HW = H * W
    M = B * HW

    # Free reshapes (contiguous dim merges) -- no transpose, no extra HBM pass.
    spec3 = network_output.reshape(B, SPECTRAL, HW)   # pixels on lanes
    tgt3 = network_input.reshape(B, OUT_CH, HW)
    # cie^T, cast to the spectral dtype so the MXU sees matching operands
    # (bf16 x bf16 -> f32 accumulate when the surrounding model runs in bf16).
    cie_t = jnp.asarray(cie).astype(spec3.dtype).T    # (3, 31), tiny

    per_row_bytes = SPECTRAL * HW * spec3.dtype.itemsize
    bt = _pick_batch_tile(B, per_row_bytes, max_block_bytes)
    G = B // bt
    # TODO(synk): if a single batch row (31*H*W) ever exceeds VMEM, add a
    # pixel-axis grid dimension with edge masking; not needed for 50x50 / 16x16.

    cost = pl.CostEstimate(
        flops=2 * SPECTRAL * OUT_CH * M,
        transcendentals=0,
        bytes_accessed=(SPECTRAL * M * spec3.dtype.itemsize
                        + OUT_CH * M * tgt3.dtype.itemsize
                        + SPECTRAL * OUT_CH * cie_t.dtype.itemsize
                        + G * 4),
    )

    partials = pl.pallas_call(
        _kernel,
        out_shape=jax.ShapeDtypeStruct((G, 1), jnp.float32),
        grid=(G,),
        in_specs=[
            pl.BlockSpec((OUT_CH, SPECTRAL), lambda i: (0, 0)),      # cie^T, resident
            pl.BlockSpec((bt, SPECTRAL, HW), lambda i: (i, 0, 0)),   # spectral tile
            pl.BlockSpec((bt, OUT_CH, HW), lambda i: (i, 0, 0)),     # target tile
        ],
        out_specs=pl.BlockSpec((1, 1), lambda i: (i, 0),             # per-step scalar
                               memory_space=pltpu.MemorySpace.SMEM),
        compiler_params=pltpu.CompilerParams(
            dimension_semantics=("parallel",),   # disjoint outputs -> megacore-safe
            vmem_limit_bytes=32 * 1024 * 1024,   # covers v5e's 16 MiB default limit
        ),
        cost_estimate=cost,
    )(cie_t, spec3, tgt3)

    total = jnp.sum(partials)
    return total * jnp.float32(1.0 / float(M * OUT_CH))


def _reference(network_input, network_output, cie):
    recon = jnp.einsum('bshw,sc->bchw', network_output, cie)
    return jnp.mean(jnp.abs(recon - network_input))


if __name__ == "__main__":
    key = jax.random.PRNGKey(0)
    k1, k2, k3 = jax.random.split(key, 3)

    B, H, W = 2, 16, 16  # small demo shapes; module hardcodes 64x50x50, same math

    # Deterministic synthetic "CIE" matrix (stands in for the numpy cie_matrix arg).
    cie = jax.random.uniform(k1, (SPECTRAL, OUT_CH), dtype=jnp.float32)
    network_output = jax.random.normal(k2, (B, SPECTRAL, H, W), dtype=jnp.float32)
    network_input = jax.random.normal(k3, (B, OUT_CH, H, W), dtype=jnp.float32)

    loss = jax.jit(reconstruct_loss)(network_input, network_output, cie)
    loss = jax.block_until_ready(loss)

    ref = _reference(network_input, network_output, cie)
    assert jnp.allclose(loss, ref, rtol=1e-3, atol=1e-4), (loss, ref)

    print("KERNEL_OK")
</pallas_src>

<mosaic_0001>
module attributes {stable_mosaic.version = 11 : i64} {
  func.func @_kernel(%arg0: i32, %arg1: memref<3x31xf32, #tpu.memory_space<vmem>>, %arg2: memref<2x31x256xf32, #tpu.memory_space<vmem>>, %arg3: memref<2x3x256xf32, #tpu.memory_space<vmem>>, %arg4: memref<1x1xf32, #tpu.memory_space<smem>>) attributes {dimension_semantics = [#tpu.dimension_semantics<parallel>], iteration_bounds = array<i64: 1>, scalar_prefetch = 0 : i64, scratch_operands = 0 : i64, tpu.core_type = #tpu.core_type<tc>, window_params = [{pipeline_mode = #tpu.pipeline_mode<synchronous>, transform_indices = @transform_0, window_bounds = array<i64: 3, 31>}, {transform_indices = @transform_1, window_bounds = array<i64: 2, 31, 256>}, {transform_indices = @transform_2, window_bounds = array<i64: 2, 3, 256>}, {transform_indices = @transform_3, window_bounds = array<i64: 1, 1>}]} {
    %c0 = arith.constant 0 : index
    %c0_0 = arith.constant 0 : index
    %0 = vector.load %arg1[%c0, %c0_0] : memref<3x31xf32, #tpu.memory_space<vmem>>, vector<3x31xf32>
    %1 = vector.shape_cast %0 : vector<3x31xf32> to vector<1x3x31xf32>
    %2 = vector.broadcast %1 : vector<1x3x31xf32> to vector<2x3x31xf32>
    %c0_1 = arith.constant 0 : index
    %c0_2 = arith.constant 0 : index
    %c0_3 = arith.constant 0 : index
    %3 = vector.load %arg2[%c0_1, %c0_2, %c0_3] : memref<2x31x256xf32, #tpu.memory_space<vmem>>, vector<2x31x256xf32>
    "tpu.trace_start"() <{level = 10 : i32, message = "bcs,bsp->bcp"}> : () -> ()
    %cst = arith.constant dense<0.000000e+00> : vector<2x3x256xf32>
    %4 = tpu.matmul %2, %3, %cst {dimension_numbers = #tpu.dot_dimension_numbers<[2], [1], [1], [2], [0, 0, 0, 1, 1, 2], [0], [0]>} : vector<2x3x31xf32>, vector<2x31x256xf32>, vector<2x3x256xf32> -> vector<2x3x256xf32>
    "tpu.trace_stop"() : () -> ()
    %c0_4 = arith.constant 0 : index
    %c0_5 = arith.constant 0 : index
    %c0_6 = arith.constant 0 : index
    %5 = vector.load %arg3[%c0_4, %c0_5, %c0_6] : memref<2x3x256xf32, #tpu.memory_space<vmem>>, vector<2x3x256xf32>
    %6 = arith.subf %4, %5 : vector<2x3x256xf32>
    %7 = math.absf %6 : vector<2x3x256xf32>
    %8 = vector.shape_cast %7 : vector<2x3x256xf32> to vector<1x2x3x256xf32>
    %cst_7 = arith.constant dense<0.000000e+00> : vector<1xf32>
    %9 = vector.multi_reduction <add>, %8, %cst_7 [1, 2, 3] : vector<1x2x3x256xf32> to vector<1xf32>
    %10 = vector.shape_cast %9 : vector<1xf32> to vector<1x1x1x1xf32>
    %11 = vector.extract %10[0, 0, 0, 0] : f32 from vector<1x1x1x1xf32>
    %c0_8 = arith.constant 0 : index
    %c0_9 = arith.constant 0 : index
    %12 = memref.load %arg4[%c0_8, %c0_9] : memref<1x1xf32, #tpu.memory_space<smem>>
    memref.store %11, %arg4[%c0_8, %c0_9] : memref<1x1xf32, #tpu.memory_space<smem>>
    return
  }
  func.func @transform_0(%arg0: i32) -> (i32, i32) {
    %c0_i32 = arith.constant 0 : i32
    %c0_i32_0 = arith.constant 0 : i32
    %c0_i32_1 = arith.constant 0 : i32
    return %c0_i32, %c0_i32_0 : i32, i32
  }
  func.func @transform_1(%arg0: i32) -> (i32, i32, i32) {
    %c0_i32 = arith.constant 0 : i32
    %c0_i32_0 = arith.constant 0 : i32
    %c0_i32_1 = arith.constant 0 : i32
    return %arg0, %c0_i32, %c0_i32_0 : i32, i32, i32
  }
  func.func @transform_2(%arg0: i32) -> (i32, i32, i32) {
    %c0_i32 = arith.constant 0 : i32
    %c0_i32_0 = arith.constant 0 : i32
    %c0_i32_1 = arith.constant 0 : i32
    return %arg0, %c0_i32, %c0_i32_0 : i32, i32, i32
  }
  func.func @transform_3(%arg0: i32) -> (i32, i32) {
    %c0_i32 = arith.constant 0 : i32
    %c0_i32_0 = arith.constant 0 : i32
    return %arg0, %c0_i32 : i32, i32
  }
}

</mosaic_0001>

<bundles_post_ra>
// kernel: reconstruct_loss.1
= control target key start
LH: loop header
LB: loop body
LE: loop exit
PB: predicated region body
PF: predicated region fallthrough
CT: control target
= control target key end

     0   :  { %vm36_vm0 = vcmask 1046528   ;;  %vm32_vm1 = vcmask 252928   ;;  %s296_s0 = inlined_call_operand.vmem [shape: f32[3,31], index: 0, kind: input, shape index: {}]   ;;  %s297_s1 = inlined_call_operand.vmem [shape: f32[2,31,256], index: 1, kind: input, shape index: {}]   ;;  %s298_s2 = inlined_call_operand.vmem [shape: f32[2,3,256], index: 2, kind: input, shape index: {}]   ;;  %s299_s3 = inlined_call_operand.hbm [shape: f32[1,1], index: 3, kind: output, shape index: {}]  }
   0x1   :  { %v30_v0 = vld [vmem:[%s297_s1 + $0x70] sm:$0x7f]  ;;  %v28_v1 = vld [vmem:[%s297_s1 + $0x60] sm:$0xff]  ;;  %v31_v2 = vld [vmem:[%s297_s1 + $0x78] sm:$0x7f] }
   0x2   :  { %190 = vmatpush.msk.msra.mxu2 %vm36_vm0, %v30_v0  ;;  %192 = vmatpush.msk.msra.mxu3 %vm36_vm0, %v31_v2  ;;  %v22_v3 = vld [vmem:[%s297_s1 + $0x30] sm:$0x7f]  ;;  %v23_v4 = vld [vmem:[%s297_s1 + $0x38] sm:$0x7f]  ;;  %v29_v6 = vld [vmem:[%s297_s1 + $0x68] sm:$0xff] }
   0x3   :  { %v26_v5 = vld [vmem:[%s297_s1 + $0x50] sm:$0xff]  ;;  %186 = vmatpush.msk.msra.mxu0 %vm36_vm0, %v22_v3  ;;  %188 = vmatpush.msk.msra.mxu1 %vm36_vm0, %v23_v4  ;;  %v20_v7 = vld [vmem:[%s297_s1 + $0x20] sm:$0xff]  ;;  %v21_v8 = vld [vmem:[%s297_s1 + $0x28] sm:$0xff] }
   0x4   :  { %102 = vmatpush.msra.mxu2 %v28_v1  ;;  %122 = vmatpush.msra.mxu3 %v29_v6  ;;  %v24_v9 = vld [vmem:[%s297_s1 + $0x40] sm:$0xff]  ;;  %v27_v10 = vld [vmem:[%s297_s1 + $0x58] sm:$0xff]  ;;  %v18_v11 = vld [vmem:[%s297_s1 + $0x10] sm:$0xff] }
   0x5   :  { %56 = vmatpush.msra.mxu0 %v20_v7  ;;  %76 = vmatpush.msra.mxu1 %v21_v8  ;;  %v19_v12 = vld [vmem:[%s297_s1 + $0x18] sm:$0xff]  ;;  %v25_v13 = vld [vmem:[%s297_s1 + $0x48] sm:$0xff]  ;;  %v15_v14 = vld [vmem:[%s296_s0] sm:$0x7] }
   0x6   :  { %103 = vmatpush.msra.mxu2 %v26_v5  ;;  %123 = vmatpush.msra.mxu3 %v27_v10 }
   0x7   :  { %8 = vsyncpa [#allocation3], 0  ;;  %57 = vmatpush.msra.mxu0 %v18_v11  ;;  %77 = vmatpush.msra.mxu1 %v19_v12  ;;  %v16_v15 = vld [vmem:[%s297_s1] sm:$0xff]  ;;  %v17_v16 = vld [vmem:[%s297_s1 + $0x8] sm:$0xff]  ;;  %vm152_vm2 = vcmask 1042432   ;;  %s176_s22 = sshll.u32 %s299_s3, 4  ;;  %s177_s22 = int_to_ptr.hbm [resolvable:$true] %s176_s22 }
   0x8   :  { %104 = vmatpush.msra.mxu2 %v24_v9  ;;  %124 = vmatpush.msra.mxu3 %v25_v13  ;;  %v129_v17 = vld [vmem:[%s298_s2] sm:$0x77]  ;;  %v130_v18 = vld [vmem:[%s298_s2 + $0x8] sm:$0x77]  ;;  %s211_s24 = smov [#allocation2]  }
   0x9   :  { %191 = vmatmul.msk.f32.vlgmr.msra.gmra.mxu2 %vm32_vm1, %v15_v14  ;;  %193 = vmatmul.msk.f32.vlgmr.msra.gmra.mxu3 %vm32_vm1, %v15_v14  ;;  %133 = vst [vmem:[#allocation1] ss:$2 sm:$0xff] %v129_v17 }
   0xa   :  { %58 = vmatpush.msra.mxu0 %v16_v15  ;;  %78 = vmatpush.msra.mxu1 %v17_v16  ;;  %137 = vst [vmem:[#allocation1 + $0x10] ss:$2 sm:$0xff] %v130_v18 }
   0xb   :  { %187 = vmatmul.msk.f32.vlgmr.msra.gmra.mxu0 %vm32_vm1, %v15_v14  ;;  %189 = vmatmul.msk.f32.vlgmr.msra.gmra.mxu1 %vm32_vm1, %v15_v14 }
  0x10   :  { %v134_v19 = vld.sshfl [vmem:[#allocation1] sm:$0xff pattern:$0x75316420]  ;;  %v135_v20 = vld.sshfl [vmem:[#allocation1 + $0x8] sm:$0xff pattern:$0x75316420] }
  0x11   :  { %v138_v25 = vld.sshfl [vmem:[#allocation1 + $0x10] sm:$0xff pattern:$0x75316420]  ;;  %v139_v26 = vld.sshfl [vmem:[#allocation1 + $0x18] sm:$0xff pattern:$0x75316420] }
  0x88   :  { %v60_v21 = vpop.f32.mrf.mxu0  ;;  %v80_v22 = vpop.f32.mrf.mxu1 }
  0x89   :  { %v144_v23 = vsub.f32 %v60_v21, %v134_v19  ;;  %v145_v24 = vsub.f32 %v80_v22, %v135_v20 }
  0x8b   :  { %v148_v27 = vand.u32 2147483647, %v144_v23  ;;  %v149_v28 = vand.u32 2147483647, %v145_v24 }
  0x8c   :  { %v106_v29 = vpop.f32.mrf.mxu2  ;;  %v126_v30 = vpop.f32.mrf.mxu3 }
  0x8d   :  { %v153_v31 = vsel %vm152_vm2, %v148_v27, 0.0  ;;  %v154_v32 = vsel %vm152_vm2, %v149_v28, 0.0  ;;  %v146_v33 = vsub.f32 %v106_v29, %v138_v25  ;;  %v147_v34 = vsub.f32 %v126_v30, %v139_v26 }
  0x8e   :  { %v155_v35 = vadd.f32 %v154_v32, %v153_v31 }
  0x8f   :  { %v150_v36 = vand.u32 2147483647, %v146_v33  ;;  %v151_v37 = vand.u32 2147483647, %v147_v34 }
  0x91   :  { %v156_v38 = vsel %vm152_vm2, %v150_v36, 0.0  ;;  %v158_v39 = vsel %vm152_vm2, %v151_v37, 0.0 }
  0x92   :  { %v157_v40 = vadd.f32 %v156_v38, %v155_v35 }
  0x94   :  { %v159_v41 = vadd.f32 %v158_v39, %v157_v40 }
  0x96   :  { %160 = vadd.xlane.f32.xlu0 %v159_v41 }
 0x109   :  { %v161_v42 = vpop.xlane.xlu0 %160 }
 0x10a   :  { %v162_v43 = vrot.slane %v161_v42, 4 }
 0x10c   :  { %v163_v44 = vadd.f32 %v162_v43, %v161_v42 }
 0x10e   :  { %v164_v45 = vrot.slane %v163_v44, 2 }
 0x110   :  { %v165_v46 = vadd.f32 %v164_v45, %v163_v44 }
 0x112   :  { %v166_v47 = vrot.slane %v165_v46, 1 }
 0x114   :  { %v167_v48 = vadd.f32 %v166_v47, %v165_v46 }
 0x116   :  { %194 = vpush %v167_v48 }
 0x147   :  { %s195_s23 = spop %194 }
 0x148   :  { %170 = sst [smem:[#allocation2]] %s195_s23 }
 0x149   :  { %179 = dma.smem_to_hbm %s211_s24, 16, %s177_s22, [#allocation3]  }
 0x14a   :  { %209 = dma.done.wait [#allocation3], 16  }
 0x14b   :  { %210 = vsyncadd [#allocation3], 4294967280 }
 0x14c   :  { %184 = sfence }
 0x14d   :  { %185 = vsyncpa [#allocation3], 1 }

</bundles_post_ra>
